<compile_context>
chip_gen: v7x
topology: tpu7x:2x2x1
jax: 0.10.0
libtpu: 0.0.40
codegen_flags: <defaults>
</compile_context>

<pallas_src>
import numpy as np
import jax
import jax.numpy as jnp
from jax import lax
from jax.experimental import pallas as pl
from jax.experimental.pallas import tpu as pltpu


def _lstm_head_kernel(x_ref, wih_ref, whh_ref, b_ref,
                      w1_ref, b1_ref, w2_ref, b2_ref,
                      out_ref,
                      hseq_ref):
    T = x_ref.shape[0]
    H = whh_ref.shape[0]
    G = whh_ref.shape[1]          # 4 * H

    # Per-lane constants for the fused gate activation:
    #   sigmoid(x) = 0.5 * tanh(0.5 * x) + 0.5   (i, f, o lanes)
    #   tanh(x)    = 1.0 * tanh(1.0 * x) + 0.0   (g lanes)
    lane = lax.broadcasted_iota(jnp.int32, (1, G), 1)
    is_g = jnp.logical_and(lane >= 2 * H, lane < 3 * H)
    gate_scale = jnp.where(is_g, 1.0, 0.5).astype(jnp.float32)   # pre & post tanh scale
    gate_add = jnp.where(is_g, 0.0, 0.5).astype(jnp.float32)     # post tanh offset

    # Input projection for all timesteps in one MXU pass: (T, 4H), one vreg.
    # Fold the tanh-argument pre-scale into xg and whh once, outside the loop.
    xg = (jnp.dot(x_ref[...], wih_ref[...], preferred_element_type=jnp.float32)
          + b_ref[...])                                          # (T, 4H)
    xg_s = xg * gate_scale                                       # (T, 4H)
    whh_s = whh_ref[...] * gate_scale                            # (H, 4H)

    # Recurrence: h/c stay in registers; fully unrolled (T static & small).
    h = jnp.zeros((1, H), jnp.float32)
    c = jnp.zeros((1, H), jnp.float32)
    for t in range(T):
        gates = xg_s[t:t + 1, :] + jnp.dot(
            h, whh_s, preferred_element_type=jnp.float32)        # (1, 4H), pre-scaled
        act = jnp.tanh(gates) * gate_scale + gate_add            # single EUP pass
        # PyTorch LSTM gate order: i, f, g, o
        i_g = act[:, 0 * H:1 * H]
        f_g = act[:, 1 * H:2 * H]
        g_g = act[:, 2 * H:3 * H]
        o_g = act[:, 3 * H:4 * H]
        c = f_g * c + i_g * g_g
        h = o_g * jnp.tanh(c)
        hseq_ref[pl.ds(t, 1), :] = h                             # static-index store

    h_seq = hseq_ref[...]                                        # (T, H)

    # Head: Linear(H, 4) -> Dropout(0.15) -> Linear(4, O) -> Softmax(dim=1)
    # TODO(synk): nn.Dropout(0.15) implemented as identity (eval-mode forward);
    #             training-mode random masking intentionally not reproduced.
    z1 = jnp.dot(h_seq, w1_ref[...],
                 preferred_element_type=jnp.float32) + b1_ref[...]    # (T, 4)
    z2 = jnp.dot(z1, w2_ref[...],
                 preferred_element_type=jnp.float32) + b2_ref[...]    # (T, O)
    z2 = z2 - jnp.max(z2, axis=1, keepdims=True)
    e = jnp.exp(z2)
    out_ref[...] = e * pl.reciprocal(jnp.sum(e, axis=1, keepdims=True), approx=True)


def _full_spec(shape):
    return pl.BlockSpec(shape, lambda i: (0,) * len(shape))


def rnn_forward(x, kernel_params):
    """x: (A, B, C) raw input (seq, input_size, lstm_batch). Returns (A, out_size)."""
    wih_t, whh_t, b, w1_t, b1, w2_t, b2 = kernel_params
    A, B, C = x.shape
    T, I = A, B
    H = whh_t.shape[0]
    O = w2_t.shape[1]

    # Only output[-1, :, :] feeds the head, i.e. only the LAST batch element's
    # sequence after permute(2, 0, 1); slice it directly (no transpose materialized).
    x_seq = x[:, :, -1].astype(jnp.float32)                      # (T, I)

    args = (x_seq, wih_t, whh_t, b, w1_t, b1, w2_t, b2)
    out = pl.pallas_call(
        _lstm_head_kernel,
        out_shape=jax.ShapeDtypeStruct((T, O), jnp.float32),
        grid=(1,),
        in_specs=[_full_spec(a.shape) for a in args],
        out_specs=_full_spec((T, O)),
        scratch_shapes=[
            pltpu.VMEM((T, H), jnp.float32),     # hidden sequence (last batch elem)
        ],
        compiler_params=pltpu.CompilerParams(dimension_semantics=("arbitrary",)),
    )(*args)
    return out


def init_raw_params(key, input_size, hidden_size, out_size):
    """PyTorch-layout parameters, deterministic uniform init."""
    ks = jax.random.split(key, 8)
    s = 1.0 / np.sqrt(hidden_size)
    u = lambda k, shape, b: jax.random.uniform(k, shape, jnp.float32, -b, b)
    wih = u(ks[0], (4 * hidden_size, input_size), s)    # weight_ih_l0
    whh = u(ks[1], (4 * hidden_size, hidden_size), s)   # weight_hh_l0
    bih = u(ks[2], (4 * hidden_size,), s)               # bias_ih_l0
    bhh = u(ks[3], (4 * hidden_size,), s)               # bias_hh_l0
    w1 = u(ks[4], (4, hidden_size), s)                  # sequence[0].weight
    b1 = u(ks[5], (4,), s)                              # sequence[0].bias
    w2 = u(ks[6], (out_size, 4), 1.0 / np.sqrt(4.0))    # sequence[2].weight
    b2 = u(ks[7], (out_size,), 1.0 / np.sqrt(4.0))      # sequence[2].bias
    return wih, whh, bih, bhh, w1, b1, w2, b2


def pack_kernel_params(raw):
    wih, whh, bih, bhh, w1, b1, w2, b2 = raw
    return (
        wih.T,                              # (I, 4H)
        whh.T,                              # (H, 4H)
        (bih + bhh)[None, :],               # (1, 4H)
        w1.T,                               # (H, 4)
        b1[None, :],                        # (1, 4)
        w2.T,                               # (4, O)
        b2[None, :],                        # (1, O)
    )


def reference(x, raw):
    """Pure-JAX reference of the PyTorch forward (eval-mode dropout)."""
    wih, whh, bih, bhh, w1, b1, w2, b2 = raw
    xp = jnp.transpose(x, (2, 0, 1)).astype(jnp.float32)   # (C, T, I)
    C, T, I = xp.shape
    H = whh.shape[1]

    def cell(carry, xt):
        h, c = carry
        gates = xt @ wih.T + bih + h @ whh.T + bhh          # (C, 4H)
        i = jax.nn.sigmoid(gates[:, 0 * H:1 * H])
        f = jax.nn.sigmoid(gates[:, 1 * H:2 * H])
        g = jnp.tanh(gates[:, 2 * H:3 * H])
        o = jax.nn.sigmoid(gates[:, 3 * H:4 * H])
        c = f * c + i * g
        h = o * jnp.tanh(c)
        return (h, c), h

    h0 = jnp.zeros((C, H), jnp.float32)
    c0 = jnp.zeros((C, H), jnp.float32)
    _, hs = lax.scan(cell, (h0, c0), jnp.transpose(xp, (1, 0, 2)))  # (T, C, H)
    out_seq = hs[:, -1, :]                                          # output[-1,:,:]
    z1 = out_seq @ w1.T + b1
    z2 = z1 @ w2.T + b2
    return jax.nn.softmax(z2, axis=1)


if __name__ == "__main__":
    # Raw input (A, B, C): A=seq=8, B=input_size=16, C=lstm_batch=2.
    A, B, C = 8, 16, 2
    hidden_size, out_size = 32, 4

    key = jax.random.PRNGKey(0)
    kx, kp = jax.random.split(key)
    x = jax.random.normal(kx, (A, B, C), jnp.float32)

    raw = init_raw_params(kp, input_size=B, hidden_size=hidden_size, out_size=out_size)
    kernel_params = pack_kernel_params(raw)

    out = rnn_forward(x, kernel_params)
    out = jax.block_until_ready(out)

    assert out.shape == (A, out_size)
    ref = reference(x, raw)
    np.testing.assert_allclose(np.asarray(out), np.asarray(ref), atol=2e-3, rtol=2e-3)

    print("KERNEL_OK")
</pallas_src>

<mosaic_0001>
module attributes {stable_mosaic.version = 11 : i64} {
  func.func @_lstm_head_kernel(%arg0: i32, %arg1: memref<8x16xf32, #tpu.memory_space<vmem>>, %arg2: memref<16x128xf32, #tpu.memory_space<vmem>>, %arg3: memref<32x128xf32, #tpu.memory_space<vmem>>, %arg4: memref<1x128xf32, #tpu.memory_space<vmem>>, %arg5: memref<32x4xf32, #tpu.memory_space<vmem>>, %arg6: memref<1x4xf32, #tpu.memory_space<vmem>>, %arg7: memref<4x4xf32, #tpu.memory_space<vmem>>, %arg8: memref<1x4xf32, #tpu.memory_space<vmem>>, %arg9: memref<8x4xf32, #tpu.memory_space<vmem>>, %arg10: memref<8x32xf32, #tpu.memory_space<vmem>>) attributes {dimension_semantics = [#tpu.dimension_semantics<arbitrary>], iteration_bounds = array<i64: 1>, scalar_prefetch = 0 : i64, scratch_operands = 1 : i64, tpu.core_type = #tpu.core_type<tc>, window_params = [{pipeline_mode = #tpu.pipeline_mode<synchronous>, transform_indices = @transform_0, window_bounds = array<i64: 8, 16>}, {pipeline_mode = #tpu.pipeline_mode<synchronous>, transform_indices = @transform_1, window_bounds = array<i64: 16, 128>}, {pipeline_mode = #tpu.pipeline_mode<synchronous>, transform_indices = @transform_2, window_bounds = array<i64: 32, 128>}, {pipeline_mode = #tpu.pipeline_mode<synchronous>, transform_indices = @transform_3, window_bounds = array<i64: 1, 128>}, {pipeline_mode = #tpu.pipeline_mode<synchronous>, transform_indices = @transform_4, window_bounds = array<i64: 32, 4>}, {pipeline_mode = #tpu.pipeline_mode<synchronous>, transform_indices = @transform_5, window_bounds = array<i64: 1, 4>}, {pipeline_mode = #tpu.pipeline_mode<synchronous>, transform_indices = @transform_6, window_bounds = array<i64: 4, 4>}, {pipeline_mode = #tpu.pipeline_mode<synchronous>, transform_indices = @transform_7, window_bounds = array<i64: 1, 4>}, {pipeline_mode = #tpu.pipeline_mode<synchronous>, transform_indices = @transform_8, window_bounds = array<i64: 8, 4>}]} {
    %0 = tpu.iota {dimensions = array<i32: 1>} : vector<1x128xi32>
    %c64_i32 = arith.constant 64 : i32
    %1 = vector.broadcast %c64_i32 : i32 to vector<1x128xi32>
    %2 = arith.cmpi sge, %0, %1 : vector<1x128xi32>
    %c96_i32 = arith.constant 96 : i32
    %3 = vector.broadcast %c96_i32 : i32 to vector<1x128xi32>
    %4 = arith.cmpi slt, %0, %3 : vector<1x128xi32>
    %5 = arith.andi %2, %4 : vector<1x128xi1>
    %cst = arith.constant 1.000000e+00 : f32
    %cst_0 = arith.constant 5.000000e-01 : f32
    %6 = vector.broadcast %cst : f32 to vector<1x128xf32>
    %7 = vector.broadcast %cst_0 : f32 to vector<1x128xf32>
    %8 = arith.select %5, %6, %7 : vector<1x128xi1>, vector<1x128xf32>
    %cst_1 = arith.constant 0.000000e+00 : f32
    %cst_2 = arith.constant 5.000000e-01 : f32
    %9 = vector.broadcast %cst_1 : f32 to vector<1x128xf32>
    %10 = vector.broadcast %cst_2 : f32 to vector<1x128xf32>
    %11 = arith.select %5, %9, %10 : vector<1x128xi1>, vector<1x128xf32>
    %c0 = arith.constant 0 : index
    %c0_3 = arith.constant 0 : index
    %12 = vector.load %arg1[%c0, %c0_3] : memref<8x16xf32, #tpu.memory_space<vmem>>, vector<8x16xf32>
    %c0_4 = arith.constant 0 : index
    %c0_5 = arith.constant 0 : index
    %13 = vector.load %arg2[%c0_4, %c0_5] : memref<16x128xf32, #tpu.memory_space<vmem>>, vector<16x128xf32>
    %cst_6 = arith.constant dense<0.000000e+00> : vector<8x128xf32>
    %14 = tpu.matmul %12, %13, %cst_6 {dimension_numbers = #tpu.dot_dimension_numbers<[1], [0], [0], [1], [0, 0, 1, 1], [], []>} : vector<8x16xf32>, vector<16x128xf32>, vector<8x128xf32> -> vector<8x128xf32>
    %c0_7 = arith.constant 0 : index
    %c0_8 = arith.constant 0 : index
    %15 = vector.load %arg4[%c0_7, %c0_8] : memref<1x128xf32, #tpu.memory_space<vmem>>, vector<1x128xf32>
    %16 = vector.broadcast %15 : vector<1x128xf32> to vector<8x128xf32>
    %17 = arith.addf %14, %16 : vector<8x128xf32>
    %18 = vector.broadcast %8 : vector<1x128xf32> to vector<8x128xf32>
    %19 = arith.mulf %17, %18 : vector<8x128xf32>
    %c0_9 = arith.constant 0 : index
    %c0_10 = arith.constant 0 : index
    %20 = vector.load %arg3[%c0_9, %c0_10] : memref<32x128xf32, #tpu.memory_space<vmem>>, vector<32x128xf32>
    %21 = vector.broadcast %8 : vector<1x128xf32> to vector<32x128xf32>
    %22 = arith.mulf %20, %21 : vector<32x128xf32>
    %cst_11 = arith.constant 0.000000e+00 : f32
    %23 = vector.broadcast %cst_11 : f32 to vector<1x32xf32>
    %cst_12 = arith.constant 0.000000e+00 : f32
    %24 = vector.broadcast %cst_12 : f32 to vector<1x32xf32>
    %25 = vector.extract_strided_slice %19 {offsets = [0, 0], sizes = [1, 128], strides = [1, 1]} : vector<8x128xf32> to vector<1x128xf32>
    %cst_13 = arith.constant dense<0.000000e+00> : vector<1x128xf32>
    %26 = tpu.matmul %23, %22, %cst_13 {dimension_numbers = #tpu.dot_dimension_numbers<[1], [0], [0], [1], [0, 0, 1, 1], [], []>} : vector<1x32xf32>, vector<32x128xf32>, vector<1x128xf32> -> vector<1x128xf32>
    %27 = arith.addf %25, %26 : vector<1x128xf32>
    %28 = math.tanh %27 : vector<1x128xf32>
    %29 = arith.mulf %28, %8 : vector<1x128xf32>
    %30 = arith.addf %29, %11 : vector<1x128xf32>
    %31 = vector.extract_strided_slice %30 {offsets = [0, 0], sizes = [1, 32], strides = [1, 1]} : vector<1x128xf32> to vector<1x32xf32>
    %32 = vector.extract_strided_slice %30 {offsets = [0, 32], sizes = [1, 32], strides = [1, 1]} : vector<1x128xf32> to vector<1x32xf32>
    %33 = vector.extract_strided_slice %30 {offsets = [0, 64], sizes = [1, 32], strides = [1, 1]} : vector<1x128xf32> to vector<1x32xf32>
    %34 = vector.extract_strided_slice %30 {offsets = [0, 96], sizes = [1, 32], strides = [1, 1]} : vector<1x128xf32> to vector<1x32xf32>
    %35 = arith.mulf %32, %24 : vector<1x32xf32>
    %36 = arith.mulf %31, %33 : vector<1x32xf32>
    %37 = arith.addf %35, %36 : vector<1x32xf32>
    %38 = math.tanh %37 : vector<1x32xf32>
    %39 = arith.mulf %34, %38 : vector<1x32xf32>
    %c0_14 = arith.constant 0 : index
    %c0_15 = arith.constant 0 : index
    %40 = vector.load %arg10[%c0_14, %c0_15] : memref<8x32xf32, #tpu.memory_space<vmem>>, vector<1x32xf32>
    tpu.vector_store %arg10[%c0_14, %c0_15], %39 {strides = array<i32>} : memref<8x32xf32, #tpu.memory_space<vmem>>, vector<1x32xf32>,
    %41 = vector.extract_strided_slice %19 {offsets = [1, 0], sizes = [1, 128], strides = [1, 1]} : vector<8x128xf32> to vector<1x128xf32>
    %cst_16 = arith.constant dense<0.000000e+00> : vector<1x128xf32>
    %42 = tpu.matmul %39, %22, %cst_16 {dimension_numbers = #tpu.dot_dimension_numbers<[1], [0], [0], [1], [0, 0, 1, 1], [], []>} : vector<1x32xf32>, vector<32x128xf32>, vector<1x128xf32> -> vector<1x128xf32>
    %43 = arith.addf %41, %42 : vector<1x128xf32>
    %44 = math.tanh %43 : vector<1x128xf32>
    %45 = arith.mulf %44, %8 : vector<1x128xf32>
    %46 = arith.addf %45, %11 : vector<1x128xf32>
    %47 = vector.extract_strided_slice %46 {offsets = [0, 0], sizes = [1, 32], strides = [1, 1]} : vector<1x128xf32> to vector<1x32xf32>
    %48 = vector.extract_strided_slice %46 {offsets = [0, 32], sizes = [1, 32], strides = [1, 1]} : vector<1x128xf32> to vector<1x32xf32>
    %49 = vector.extract_strided_slice %46 {offsets = [0, 64], sizes = [1, 32], strides = [1, 1]} : vector<1x128xf32> to vector<1x32xf32>
    %50 = vector.extract_strided_slice %46 {offsets = [0, 96], sizes = [1, 32], strides = [1, 1]} : vector<1x128xf32> to vector<1x32xf32>
    %51 = arith.mulf %48, %37 : vector<1x32xf32>
    %52 = arith.mulf %47, %49 : vector<1x32xf32>
    %53 = arith.addf %51, %52 : vector<1x32xf32>
    %54 = math.tanh %53 : vector<1x32xf32>
    %55 = arith.mulf %50, %54 : vector<1x32xf32>
    %c1 = arith.constant 1 : index
    %c0_17 = arith.constant 0 : index
    %56 = vector.load %arg10[%c1, %c0_17] : memref<8x32xf32, #tpu.memory_space<vmem>>, vector<1x32xf32>
    tpu.vector_store %arg10[%c1, %c0_17], %55 {strides = array<i32>} : memref<8x32xf32, #tpu.memory_space<vmem>>, vector<1x32xf32>,
    %57 = vector.extract_strided_slice %19 {offsets = [2, 0], sizes = [1, 128], strides = [1, 1]} : vector<8x128xf32> to vector<1x128xf32>
    %cst_18 = arith.constant dense<0.000000e+00> : vector<1x128xf32>
    %58 = tpu.matmul %55, %22, %cst_18 {dimension_numbers = #tpu.dot_dimension_numbers<[1], [0], [0], [1], [0, 0, 1, 1], [], []>} : vector<1x32xf32>, vector<32x128xf32>, vector<1x128xf32> -> vector<1x128xf32>
    %59 = arith.addf %57, %58 : vector<1x128xf32>
    %60 = math.tanh %59 : vector<1x128xf32>
    %61 = arith.mulf %60, %8 : vector<1x128xf32>
    %62 = arith.addf %61, %11 : vector<1x128xf32>
    %63 = vector.extract_strided_slice %62 {offsets = [0, 0], sizes = [1, 32], strides = [1, 1]} : vector<1x128xf32> to vector<1x32xf32>
    %64 = vector.extract_strided_slice %62 {offsets = [0, 32], sizes = [1, 32], strides = [1, 1]} : vector<1x128xf32> to vector<1x32xf32>
    %65 = vector.extract_strided_slice %62 {offsets = [0, 64], sizes = [1, 32], strides = [1, 1]} : vector<1x128xf32> to vector<1x32xf32>
    %66 = vector.extract_strided_slice %62 {offsets = [0, 96], sizes = [1, 32], strides = [1, 1]} : vector<1x128xf32> to vector<1x32xf32>
    %67 = arith.mulf %64, %53 : vector<1x32xf32>
    %68 = arith.mulf %63, %65 : vector<1x32xf32>
    %69 = arith.addf %67, %68 : vector<1x32xf32>
    %70 = math.tanh %69 : vector<1x32xf32>
    %71 = arith.mulf %66, %70 : vector<1x32xf32>
    %c2 = arith.constant 2 : index
    %c0_19 = arith.constant 0 : index
    %72 = vector.load %arg10[%c2, %c0_19] : memref<8x32xf32, #tpu.memory_space<vmem>>, vector<1x32xf32>
    tpu.vector_store %arg10[%c2, %c0_19], %71 {strides = array<i32>} : memref<8x32xf32, #tpu.memory_space<vmem>>, vector<1x32xf32>,
    %73 = vector.extract_strided_slice %19 {offsets = [3, 0], sizes = [1, 128], strides = [1, 1]} : vector<8x128xf32> to vector<1x128xf32>
    %cst_20 = arith.constant dense<0.000000e+00> : vector<1x128xf32>
    %74 = tpu.matmul %71, %22, %cst_20 {dimension_numbers = #tpu.dot_dimension_numbers<[1], [0], [0], [1], [0, 0, 1, 1], [], []>} : vector<1x32xf32>, vector<32x128xf32>, vector<1x128xf32> -> vector<1x128xf32>
    %75 = arith.addf %73, %74 : vector<1x128xf32>
    %76 = math.tanh %75 : vector<1x128xf32>
    %77 = arith.mulf %76, %8 : vector<1x128xf32>
    %78 = arith.addf %77, %11 : vector<1x128xf32>
    %79 = vector.extract_strided_slice %78 {offsets = [0, 0], sizes = [1, 32], strides = [1, 1]} : vector<1x128xf32> to vector<1x32xf32>
    %80 = vector.extract_strided_slice %78 {offsets = [0, 32], sizes = [1, 32], strides = [1, 1]} : vector<1x128xf32> to vector<1x32xf32>
    %81 = vector.extract_strided_slice %78 {offsets = [0, 64], sizes = [1, 32], strides = [1, 1]} : vector<1x128xf32> to vector<1x32xf32>
    %82 = vector.extract_strided_slice %78 {offsets = [0, 96], sizes = [1, 32], strides = [1, 1]} : vector<1x128xf32> to vector<1x32xf32>
    %83 = arith.mulf %80, %69 : vector<1x32xf32>
    %84 = arith.mulf %79, %81 : vector<1x32xf32>
    %85 = arith.addf %83, %84 : vector<1x32xf32>
    %86 = math.tanh %85 : vector<1x32xf32>
    %87 = arith.mulf %82, %86 : vector<1x32xf32>
    %c3 = arith.constant 3 : index
    %c0_21 = arith.constant 0 : index
    %88 = vector.load %arg10[%c3, %c0_21] : memref<8x32xf32, #tpu.memory_space<vmem>>, vector<1x32xf32>
    tpu.vector_store %arg10[%c3, %c0_21], %87 {strides = array<i32>} : memref<8x32xf32, #tpu.memory_space<vmem>>, vector<1x32xf32>,
    %89 = vector.extract_strided_slice %19 {offsets = [4, 0], sizes = [1, 128], strides = [1, 1]} : vector<8x128xf32> to vector<1x128xf32>
    %cst_22 = arith.constant dense<0.000000e+00> : vector<1x128xf32>
    %90 = tpu.matmul %87, %22, %cst_22 {dimension_numbers = #tpu.dot_dimension_numbers<[1], [0], [0], [1], [0, 0, 1, 1], [], []>} : vector<1x32xf32>, vector<32x128xf32>, vector<1x128xf32> -> vector<1x128xf32>
    %91 = arith.addf %89, %90 : vector<1x128xf32>
    %92 = math.tanh %91 : vector<1x128xf32>
    %93 = arith.mulf %92, %8 : vector<1x128xf32>
    %94 = arith.addf %93, %11 : vector<1x128xf32>
    %95 = vector.extract_strided_slice %94 {offsets = [0, 0], sizes = [1, 32], strides = [1, 1]} : vector<1x128xf32> to vector<1x32xf32>
    %96 = vector.extract_strided_slice %94 {offsets = [0, 32], sizes = [1, 32], strides = [1, 1]} : vector<1x128xf32> to vector<1x32xf32>
    %97 = vector.extract_strided_slice %94 {offsets = [0, 64], sizes = [1, 32], strides = [1, 1]} : vector<1x128xf32> to vector<1x32xf32>
    %98 = vector.extract_strided_slice %94 {offsets = [0, 96], sizes = [1, 32], strides = [1, 1]} : vector<1x128xf32> to vector<1x32xf32>
    %99 = arith.mulf %96, %85 : vector<1x32xf32>
    %100 = arith.mulf %95, %97 : vector<1x32xf32>
    %101 = arith.addf %99, %100 : vector<1x32xf32>
    %102 = math.tanh %101 : vector<1x32xf32>
    %103 = arith.mulf %98, %102 : vector<1x32xf32>
    %c4 = arith.constant 4 : index
    %c0_23 = arith.constant 0 : index
    %104 = vector.load %arg10[%c4, %c0_23] : memref<8x32xf32, #tpu.memory_space<vmem>>, vector<1x32xf32>
    tpu.vector_store %arg10[%c4, %c0_23], %103 {strides = array<i32>} : memref<8x32xf32, #tpu.memory_space<vmem>>, vector<1x32xf32>,
    %105 = vector.extract_strided_slice %19 {offsets = [5, 0], sizes = [1, 128], strides = [1, 1]} : vector<8x128xf32> to vector<1x128xf32>
    %cst_24 = arith.constant dense<0.000000e+00> : vector<1x128xf32>
    %106 = tpu.matmul %103, %22, %cst_24 {dimension_numbers = #tpu.dot_dimension_numbers<[1], [0], [0], [1], [0, 0, 1, 1], [], []>} : vector<1x32xf32>, vector<32x128xf32>, vector<1x128xf32> -> vector<1x128xf32>
    %107 = arith.addf %105, %106 : vector<1x128xf32>
    %108 = math.tanh %107 : vector<1x128xf32>
    %109 = arith.mulf %108, %8 : vector<1x128xf32>
    %110 = arith.addf %109, %11 : vector<1x128xf32>
    %111 = vector.extract_strided_slice %110 {offsets = [0, 0], sizes = [1, 32], strides = [1, 1]} : vector<1x128xf32> to vector<1x32xf32>
    %112 = vector.extract_strided_slice %110 {offsets = [0, 32], sizes = [1, 32], strides = [1, 1]} : vector<1x128xf32> to vector<1x32xf32>
    %113 = vector.extract_strided_slice %110 {offsets = [0, 64], sizes = [1, 32], strides = [1, 1]} : vector<1x128xf32> to vector<1x32xf32>
    %114 = vector.extract_strided_slice %110 {offsets = [0, 96], sizes = [1, 32], strides = [1, 1]} : vector<1x128xf32> to vector<1x32xf32>
    %115 = arith.mulf %112, %101 : vector<1x32xf32>
    %116 = arith.mulf %111, %113 : vector<1x32xf32>
    %117 = arith.addf %115, %116 : vector<1x32xf32>
    %118 = math.tanh %117 : vector<1x32xf32>
    %119 = arith.mulf %114, %118 : vector<1x32xf32>
    %c5 = arith.constant 5 : index
    %c0_25 = arith.constant 0 : index
    %120 = vector.load %arg10[%c5, %c0_25] : memref<8x32xf32, #tpu.memory_space<vmem>>, vector<1x32xf32>
    tpu.vector_store %arg10[%c5, %c0_25], %119 {strides = array<i32>} : memref<8x32xf32, #tpu.memory_space<vmem>>, vector<1x32xf32>,
    %121 = vector.extract_strided_slice %19 {offsets = [6, 0], sizes = [1, 128], strides = [1, 1]} : vector<8x128xf32> to vector<1x128xf32>
    %cst_26 = arith.constant dense<0.000000e+00> : vector<1x128xf32>
    %122 = tpu.matmul %119, %22, %cst_26 {dimension_numbers = #tpu.dot_dimension_numbers<[1], [0], [0], [1], [0, 0, 1, 1], [], []>} : vector<1x32xf32>, vector<32x128xf32>, vector<1x128xf32> -> vector<1x128xf32>
    %123 = arith.addf %121, %122 : vector<1x128xf32>
    %124 = math.tanh %123 : vector<1x128xf32>
    %125 = arith.mulf %124, %8 : vector<1x128xf32>
    %126 = arith.addf %125, %11 : vector<1x128xf32>
    %127 = vector.extract_strided_slice %126 {offsets = [0, 0], sizes = [1, 32], strides = [1, 1]} : vector<1x128xf32> to vector<1x32xf32>
    %128 = vector.extract_strided_slice %126 {offsets = [0, 32], sizes = [1, 32], strides = [1, 1]} : vector<1x128xf32> to vector<1x32xf32>
    %129 = vector.extract_strided_slice %126 {offsets = [0, 64], sizes = [1, 32], strides = [1, 1]} : vector<1x128xf32> to vector<1x32xf32>
    %130 = vector.extract_strided_slice %126 {offsets = [0, 96], sizes = [1, 32], strides = [1, 1]} : vector<1x128xf32> to vector<1x32xf32>
    %131 = arith.mulf %128, %117 : vector<1x32xf32>
    %132 = arith.mulf %127, %129 : vector<1x32xf32>
    %133 = arith.addf %131, %132 : vector<1x32xf32>
    %134 = math.tanh %133 : vector<1x32xf32>
    %135 = arith.mulf %130, %134 : vector<1x32xf32>
    %c6 = arith.constant 6 : index
    %c0_27 = arith.constant 0 : index
    %136 = vector.load %arg10[%c6, %c0_27] : memref<8x32xf32, #tpu.memory_space<vmem>>, vector<1x32xf32>
    tpu.vector_store %arg10[%c6, %c0_27], %135 {strides = array<i32>} : memref<8x32xf32, #tpu.memory_space<vmem>>, vector<1x32xf32>,
    %137 = vector.extract_strided_slice %19 {offsets = [7, 0], sizes = [1, 128], strides = [1, 1]} : vector<8x128xf32> to vector<1x128xf32>
    %cst_28 = arith.constant dense<0.000000e+00> : vector<1x128xf32>
    %138 = tpu.matmul %135, %22, %cst_28 {dimension_numbers = #tpu.dot_dimension_numbers<[1], [0], [0], [1], [0, 0, 1, 1], [], []>} : vector<1x32xf32>, vector<32x128xf32>, vector<1x128xf32> -> vector<1x128xf32>
    %139 = arith.addf %137, %138 : vector<1x128xf32>
    %140 = math.tanh %139 : vector<1x128xf32>
    %141 = arith.mulf %140, %8 : vector<1x128xf32>
    %142 = arith.addf %141, %11 : vector<1x128xf32>
    %143 = vector.extract_strided_slice %142 {offsets = [0, 0], sizes = [1, 32], strides = [1, 1]} : vector<1x128xf32> to vector<1x32xf32>
    %144 = vector.extract_strided_slice %142 {offsets = [0, 32], sizes = [1, 32], strides = [1, 1]} : vector<1x128xf32> to vector<1x32xf32>
    %145 = vector.extract_strided_slice %142 {offsets = [0, 64], sizes = [1, 32], strides = [1, 1]} : vector<1x128xf32> to vector<1x32xf32>
    %146 = vector.extract_strided_slice %142 {offsets = [0, 96], sizes = [1, 32], strides = [1, 1]} : vector<1x128xf32> to vector<1x32xf32>
    %147 = arith.mulf %144, %133 : vector<1x32xf32>
    %148 = arith.mulf %143, %145 : vector<1x32xf32>
    %149 = arith.addf %147, %148 : vector<1x32xf32>
    %150 = math.tanh %149 : vector<1x32xf32>
    %151 = arith.mulf %146, %150 : vector<1x32xf32>
    %c7 = arith.constant 7 : index
    %c0_29 = arith.constant 0 : index
    %152 = vector.load %arg10[%c7, %c0_29] : memref<8x32xf32, #tpu.memory_space<vmem>>, vector<1x32xf32>
    tpu.vector_store %arg10[%c7, %c0_29], %151 {strides = array<i32>} : memref<8x32xf32, #tpu.memory_space<vmem>>, vector<1x32xf32>,
    %c0_30 = arith.constant 0 : index
    %c0_31 = arith.constant 0 : index
    %153 = vector.load %arg10[%c0_30, %c0_31] : memref<8x32xf32, #tpu.memory_space<vmem>>, vector<8x32xf32>
    %c0_32 = arith.constant 0 : index
    %c0_33 = arith.constant 0 : index
    %154 = vector.load %arg5[%c0_32, %c0_33] : memref<32x4xf32, #tpu.memory_space<vmem>>, vector<32x4xf32>
    %cst_34 = arith.constant dense<0.000000e+00> : vector<8x4xf32>
    %155 = tpu.matmul %153, %154, %cst_34 {dimension_numbers = #tpu.dot_dimension_numbers<[1], [0], [0], [1], [0, 0, 1, 1], [], []>} : vector<8x32xf32>, vector<32x4xf32>, vector<8x4xf32> -> vector<8x4xf32>
    %c0_35 = arith.constant 0 : index
    %c0_36 = arith.constant 0 : index
    %156 = vector.load %arg6[%c0_35, %c0_36] : memref<1x4xf32, #tpu.memory_space<vmem>>, vector<1x4xf32>
    %157 = vector.broadcast %156 : vector<1x4xf32> to vector<8x4xf32>
    %158 = arith.addf %155, %157 : vector<8x4xf32>
    %c0_37 = arith.constant 0 : index
    %c0_38 = arith.constant 0 : index
    %159 = vector.load %arg7[%c0_37, %c0_38] : memref<4x4xf32, #tpu.memory_space<vmem>>, vector<4x4xf32>
    %cst_39 = arith.constant dense<0.000000e+00> : vector<8x4xf32>
    %160 = tpu.matmul %158, %159, %cst_39 {dimension_numbers = #tpu.dot_dimension_numbers<[1], [0], [0], [1], [0, 0, 1, 1], [], []>} : vector<8x4xf32>, vector<4x4xf32>, vector<8x4xf32> -> vector<8x4xf32>
    %c0_40 = arith.constant 0 : index
    %c0_41 = arith.constant 0 : index
    %161 = vector.load %arg8[%c0_40, %c0_41] : memref<1x4xf32, #tpu.memory_space<vmem>>, vector<1x4xf32>
    %162 = vector.broadcast %161 : vector<1x4xf32> to vector<8x4xf32>
    %163 = arith.addf %160, %162 : vector<8x4xf32>
    %cst_42 = arith.constant dense<0xFF800000> : vector<8xf32>
    %164 = vector.multi_reduction <maximumf>, %163, %cst_42 [1] : vector<8x4xf32> to vector<8xf32>
    %165 = vector.shape_cast %164 : vector<8xf32> to vector<8x1xf32>
    %166 = vector.broadcast %165 : vector<8x1xf32> to vector<8x4xf32>
    %167 = arith.subf %163, %166 : vector<8x4xf32>
    %168 = math.exp %167 : vector<8x4xf32>
    %cst_43 = arith.constant dense<0.000000e+00> : vector<8xf32>
    %169 = vector.multi_reduction <add>, %168, %cst_43 [1] : vector<8x4xf32> to vector<8xf32>
    %170 = vector.shape_cast %169 : vector<8xf32> to vector<8x1xf32>
    %171 = tpu.reciprocal %170 {approx = true} : vector<8x1xf32> -> vector<8x1xf32>
    %172 = vector.broadcast %171 : vector<8x1xf32> to vector<8x4xf32>
    %173 = arith.mulf %168, %172 : vector<8x4xf32>
    %c0_44 = arith.constant 0 : index
    %c0_45 = arith.constant 0 : index
    %174 = vector.load %arg9[%c0_44, %c0_45] : memref<8x4xf32, #tpu.memory_space<vmem>>, vector<8x4xf32>
    tpu.vector_store %arg9[%c0_44, %c0_45], %173 {strides = array<i32>} : memref<8x4xf32, #tpu.memory_space<vmem>>, vector<8x4xf32>,
    return
  }
  func.func @transform_0(%arg0: i32) -> (i32, i32) {
    %c0_i32 = arith.constant 0 : i32
    %c0_i32_0 = arith.constant 0 : i32
    %c0_i32_1 = arith.constant 0 : i32
    return %c0_i32, %c0_i32_0 : i32, i32
  }
  func.func @transform_1(%arg0: i32) -> (i32, i32) {
    %c0_i32 = arith.constant 0 : i32
    %c0_i32_0 = arith.constant 0 : i32
    %c0_i32_1 = arith.constant 0 : i32
    return %c0_i32, %c0_i32_0 : i32, i32
  }
  func.func @transform_2(%arg0: i32) -> (i32, i32) {
    %c0_i32 = arith.constant 0 : i32
    %c0_i32_0 = arith.constant 0 : i32
    %c0_i32_1 = arith.constant 0 : i32
    return %c0_i32, %c0_i32_0 : i32, i32
  }
  func.func @transform_3(%arg0: i32) -> (i32, i32) {
    %c0_i32 = arith.constant 0 : i32
    %c0_i32_0 = arith.constant 0 : i32
    %c0_i32_1 = arith.constant 0 : i32
    return %c0_i32, %c0_i32_0 : i32, i32
  }
  func.func @transform_4(%arg0: i32) -> (i32, i32) {
    %c0_i32 = arith.constant 0 : i32
    %c0_i32_0 = arith.constant 0 : i32
    %c0_i32_1 = arith.constant 0 : i32
    return %c0_i32, %c0_i32_0 : i32, i32
  }
  func.func @transform_5(%arg0: i32) -> (i32, i32) {
    %c0_i32 = arith.constant 0 : i32
    %c0_i32_0 = arith.constant 0 : i32
    %c0_i32_1 = arith.constant 0 : i32
    return %c0_i32, %c0_i32_0 : i32, i32
  }
  func.func @transform_6(%arg0: i32) -> (i32, i32) {
    %c0_i32 = arith.constant 0 : i32
    %c0_i32_0 = arith.constant 0 : i32
    %c0_i32_1 = arith.constant 0 : i32
    return %c0_i32, %c0_i32_0 : i32, i32
  }
  func.func @transform_7(%arg0: i32) -> (i32, i32) {
    %c0_i32 = arith.constant 0 : i32
    %c0_i32_0 = arith.constant 0 : i32
    %c0_i32_1 = arith.constant 0 : i32
    return %c0_i32, %c0_i32_0 : i32, i32
  }
  func.func @transform_8(%arg0: i32) -> (i32, i32) {
    %c0_i32 = arith.constant 0 : i32
    %c0_i32_0 = arith.constant 0 : i32
    %c0_i32_1 = arith.constant 0 : i32
    return %c0_i32, %c0_i32_0 : i32, i32
  }
}

</mosaic_0001>

<bundles_post_ra>
// kernel: tpu_custom_call.1
= control target key start
LH: loop header
LB: loop body
LE: loop exit
PB: predicated region body
PF: predicated region fallthrough
CT: control target
= control target key end

     0   :  { %13 = vsyncpa [#allocation4], 0  ;;  %s1486_s27 = smov [#allocation3]   ;;  %s1766_s0 = inlined_call_operand.vmem [shape: f32[8,16], index: 0, kind: input, shape index: {}]   ;;  %s1767_s1 = inlined_call_operand.hbm [shape: f32[16,128], index: 1, kind: input, shape index: {}]   ;;  %s1768_s2 = inlined_call_operand.vmem [shape: f32[32,128], index: 2, kind: input, shape index: {}]   ;;  %s1769_s3 = inlined_call_operand.vmem [shape: f32[1,128], index: 3, kind: input, shape index: {}]   ;;  %s1770_s4 = inlined_call_operand.vmem [shape: f32[32,4], index: 4, kind: input, shape index: {}]   ;;  %s1771_s5 = inlined_call_operand.vmem [shape: f32[1,4], index: 5, kind: input, shape index: {}]   ;;  %s1772_s6 = inlined_call_operand.vmem [shape: f32[4,4], index: 6, kind: input, shape index: {}]   ;;  %s1773_s7 = inlined_call_operand.vmem [shape: f32[1,4], index: 7, kind: input, shape index: {}]   ;;  %s1774_s8 = inlined_call_operand.vmem [shape: f32[8,4], index: 8, kind: output, shape index: {}]  }
   0x1   :  { %s21_s28 = sshll.u32 %s1486_s27, 4  ;;  %s1462_s9 = scalar_lea.hbm %s1767_s1, 256  ;;  %s22_s28 = int_to_ptr.vmem [resolvable:$true] %s21_s28 }
   0x2   :  { %p1463_p0 = scmp.ne.s32.totalorder %s1767_s1, %s1462_s9  ;;  %p1466_p1 = scmp.lt.u32.totalorder %s1462_s9, %s1767_s1 }
   0x4   :  { %p1468_p2 = pnand %p1466_p1, %p1463_p0 }
   0x6   :  { %1471 = shalt.err (!%p1468_p2)
}
   0x7   :  { %s1472_s14 = scalar_lea.vmem %s22_s28, 256  ;;  %p1477_p4 = scmp.lt.s32.totalorder %s22_s28, %s22_s28 }
   0x8   :  { %p1473_p3 = scmp.ne.s32.totalorder %s22_s28, %s1472_s14  ;;  %p1478_p5 = scmp.lt.s32.totalorder %s1472_s14, %s1472_s14 }
   0xa   :  { %p1479_p6 = por %p1478_p5, %p1477_p4 }
   0xc   :  { %p1480_p7 = pnand %p1479_p6, %p1473_p3 }
   0xe   :  { %1483 = shalt.err (!%p1480_p7)
}
   0xf   :  { %s1487_s15 = smov 128   ;;  %s1488_s16 = smov 8  }
  0x10   :  { %27 = dma.hbm_to_vmem [thread:$0]  %s1767_s1, 256, %s22_s28, [#allocation4], %s1487_s15, %s1487_s15, %s1488_s16  }
  0x11   :  { %1484 = dma.done.wait [#allocation4], 256  }
  0x12   :  { %1485 = vsyncadd [#allocation4], 4294967040  ;;  %v43_v0 = vlaneseq  ;;  %v1489_v1 = vmov 0.0|0.0   ;;  %vm1490_vm0 = vmmov 0   ;;  %v1491_v3 = vmov 0.0   ;;  %v51_v7 = vld [vmem:[#allocation3] sm:$0xff] }
  0x13   :  { %1360 = vmatprep.subr.bf16.mxu0 %v1489_v1  ;;  %1363 = vmatprep.subr.bf16.mxu1 %v1489_v1  ;;  %v1492_v5 = vmov 0.5   ;;  %v52_v8 = vld [vmem:[#allocation3 + $0x8] sm:$0xff]  ;;  %v135_v9 = vld [vmem:[%s1768_s2] sm:$0xff]  ;;  %v136_v11 = vld [vmem:[%s1768_s2 + $0x8] sm:$0xff]  ;;  %vm60_vm4 = vcmask 130048   ;;  %s1494_s28 = smov 32  }
  0x14   :  { %v44_v2 = vand.u32 127, %v43_v0  ;;  %1253 = vmatprep.mubr.msk.f32.mxu0 %vm1490_vm0, %v1491_v3  ;;  %1264 = vmatprep.mubr.msk.f32.mxu1 %vm1490_vm0, %v1491_v3  ;;  %v1361_v10 = vpack.c.bf16 %v52_v8, %v51_v7  ;;  %v137_v13 = vld [vmem:[%s1768_s2 + $0x10] sm:$0xff]  ;;  %v138_v15 = vld [vmem:[%s1768_s2 + $0x18] sm:$0xff]  ;;  %v50_v17 = vld [vmem:[%s1766_s0] sm:$0xff]  ;;  %vm242_vm5 = vcmask 253952   ;;  %vm143_vm6 = vcmask 261120  }
  0x15   :  { %v1185_v21 = vld [vmem:[%s1769_s3] ss:$0 sm:$0xff]  ;;  %s1493_s3 = smov 64   ;;  %vm347_vm7 = vcmask 254977   ;;  %vm563_vm8 = vcmask 257027   ;;  %vm779_vm9 = vcmask 259077  }
  0x16   :  { %vm45_vm1 = vcmp.ge.s32.totalorder %v44_v2, 64  ;;  %vm46_vm2 = vcmp.lt.s32.totalorder %v44_v2, 96  ;;  %1362 = vmatpush3.bf16.msra.mxu0 %v1361_v10  ;;  %vm1094_vm10 = vcmask 1043456   ;;  %vm455_vm11 = vcmask 256002  }
  0x17   :  { %vm1558_vm3 = vmand %vm45_vm1, %vm46_vm2  ;;  %1369 = vmatprep.subr.bf16.mxu0 %v1489_v1  ;;  %vm671_vm12 = vcmask 258052   ;;  %vm887_vm13 = vcmask 260102   ;;  %vm995_vm14 = vcmask 261127   ;;  %vm1090_vm15 = vcmask 31744  }
  0x18   :  { %v1564_v6 = vsel %vm1558_vm3, 1.0, %v1492_v5  ;;  %v1616_v30 = vsel %vm1558_vm3, 0.0, %v1492_v5 }
  0x19   :  { %v139_v12 = vmul.f32 %v135_v9, %v1564_v6  ;;  %v140_v14 = vmul.f32 %v136_v11, %v1564_v6  ;;  %v141_v16 = vmul.f32 %v137_v13, %v1564_v6  ;;  %v142_v18 = vmul.f32 %v138_v15, %v1564_v6  ;;  %1254 = vmatmul.mubr.msk.f32.vlgmr.msra.gmra.mrb[0].mxu0 %vm60_vm4, %v50_v17 }
  0x1a   :  { %1275 = vmatprep.mubr.msk.f32.mxu0 %vm1490_vm0, %v1491_v3 }
  0x1b   :  { %v1585_v19 = vpack.c.bf16 %v140_v14, %v139_v12  ;;  %v1589_v20 = vpack.c.bf16 %v142_v18, %v141_v16 }
  0x1d   :  { %1365 = vmatpush3.bf16.msra.mxu1 %v1585_v19  ;;  %1371 = vmatpush3.bf16.msra.mxu0 %v1585_v19 }
  0x1e   :  { %1366 = vmatprep.subr.bf16.mxu1 %v1489_v1  ;;  %1372 = vmatprep.subr.bf16.mxu0 %v1489_v1 }
  0x21   :  { %1368 = vmatpush3.bf16.msra.mxu1 %v1589_v20  ;;  %1374 = vmatpush3.bf16.msra.mxu0 %v1589_v20 }
  0x22   :  { %1375 = vmatprep.subr.bf16.mxu1 %v1489_v1  ;;  %1381 = vmatprep.subr.bf16.mxu0 %v1489_v1 }
  0x24   :  { %1265 = vmatmul.mubr.f32.vlgmr.msra.gmra.mrb[0].mxu1 %v1491_v3 }
  0x25   :  { %1377 = vmatpush3.bf16.msra.mxu1 %v1585_v19  ;;  %1286 = vmatprep.mubr.msk.f32.mxu1 %vm1490_vm0, %v1491_v3 }
  0x26   :  { %1378 = vmatprep.subr.bf16.mxu1 %v1489_v1 }
  0x29   :  { %1380 = vmatpush3.bf16.msra.mxu1 %v1589_v20 }
  0x2a   :  { %1387 = vmatprep.subr.bf16.mxu1 %v1489_v1 }
  0xec   :  { %v130_v22 = vpop.f32.mrb[0].mxu0 }
  0xed   :  { %v131_v23 = vadd.f32 %v1185_v21, %v130_v22  ;;  %v1255_v24 = vpop.f32.mrb[1].mxu0 }
  0xef   :  { %v1611_v25 = vmul.f32 %v131_v23, %v1564_v6 }
  0xf7   :  { %v213_v26 = vpop.f32.mrb[0].mxu1 }
  0xf8   :  { %v217_v27 = vadd.f32 %v213_v26, %v1611_v25  ;;  %v1266_v28 = vpop.f32.mrb[1].mxu1 }
  0xfa   :  { %1426 = vtanh.f32 %v217_v27 }
 0x104   :  { %v1427_v29 = vpop.eup %1426 }
 0x105   :  { %v219_v31 = vmul.f32 %v1427_v29, %v1564_v6 }
 0x107   :  { %v220_v32 = vadd.f32 %v219_v31, %v1616_v30 }
 0x109   :  { %223 = vrot.lane.b32.xlu0 %v220_v32, %s1493_s3  ;;  %v221_v35 = vmul.f32 0.0, %v220_v32 }
 0x17b   :  { %v224_v33 = vpop.permute.xlu0 %223 }
 0x17c   :  { %v226_v34 = vmul.f32 %v224_v33, %v220_v32 }
 0x17e   :  { %228 = vrot.lane.b32.xlu0 %v226_v34, %s1494_s28 }
 0x1f0   :  { %v229_v36 = vpop.permute.xlu0 %228 }
 0x1f1   :  { %v231_v37 = vadd.f32 %v229_v36, %v221_v35 }
 0x1f3   :  { %1428 = vtanh.f32 %v231_v37  ;;  %v324_v51 = vrot.slane %v231_v37, 7 }
 0x1fd   :  { %v1429_v38 = vpop.eup %1428 }
 0x1fe   :  { %234 = vrot.lane.b32.xlu1 %v1429_v38, %s1493_s3 }
 0x270   :  { %v235_v39 = vpop.permute.xlu1 %234 }
 0x271   :  { %v237_v40 = vmul.f32 %v235_v39, %v220_v32 }
 0x273   :  { %239 = vrot.lane.b32.xlu1 %v237_v40, %s1494_s28 }
 0x2e5   :  { %v240_v41 = vpop.permute.xlu1 %239 }
 0x2e6   :  { %243 = vst.msk [vmem:[#allocation2] sm:$0x1] %vm242_vm5, %v240_v41  ;;  %1276 = vmatmul.mubr.msk.f32.vlgmr.msra.gmra.mrb[2].mxu0 %vm143_vm6, %v240_v41 }
 0x2e7   :  { %1383 = vmatpush3.bf16.msra.mxu0 %v1585_v19  ;;  %1297 = vmatprep.mubr.msk.f32.mxu0 %vm1490_vm0, %v1491_v3 }
 0x2e8   :  { %1384 = vmatprep.subr.bf16.mxu0 %v1489_v1 }
 0x2eb   :  { %1386 = vmatpush3.bf16.msra.mxu0 %v1589_v20 }
 0x2ec   :  { %1393 = vmatprep.subr.bf16.mxu0 %v1489_v1 }
 0x3b9   :  { %v312_v42 = vpop.f32.mrb[2].mxu0 }
 0x3ba   :  { %v317_v43 = vrot.slane %v312_v42, 7  ;;  %v1277_v44 = vpop.f32.mrb[3].mxu0 }
 0x3bc   :  { %v319_v45 = vadd.f32 %v317_v43, %v1611_v25 }
 0x3be   :  { %1430 = vtanh.f32 %v319_v45 }
 0x3c8   :  { %v1431_v46 = vpop.eup %1430 }
 0x3c9   :  { %v321_v47 = vmul.f32 %v1431_v46, %v1564_v6 }
 0x3cb   :  { %v322_v48 = vadd.f32 %v321_v47, %v1616_v30 }
 0x3cd   :  { %328 = vrot.lane.b32.xlu0 %v322_v48, %s1493_s3  ;;  %v326_v52 = vmul.f32 %v324_v51, %v322_v48 }
 0x43f   :  { %v329_v49 = vpop.permute.xlu0 %328 }
 0x440   :  { %v331_v50 = vmul.f32 %v329_v49, %v322_v48 }
 0x442   :  { %333 = vrot.lane.b32.xlu1 %v331_v50, %s1494_s28 }
 0x4b4   :  { %v334_v53 = vpop.permute.xlu1 %333 }
 0x4b5   :  { %v336_v54 = vadd.f32 %v334_v53, %v326_v52 }
 0x4b7   :  { %1432 = vtanh.f32 %v336_v54  ;;  %v432_v8 = vrot.slane %v336_v54, 7 }
 0x4c1   :  { %v1433_v55 = vpop.eup %1432 }
 0x4c2   :  { %339 = vrot.lane.b32.xlu0 %v1433_v55, %s1493_s3 }
 0x534   :  { %v340_v56 = vpop.permute.xlu0 %339 }
 0x535   :  { %v1637_v57 = vmul.f32 %v340_v56, %v322_v48 }
 0x537   :  { %v349_v58 = vrot.slane %v1637_v57, 1 }
 0x539   :  { %350 = vrot.lane.b32.xlu1 %v349_v58, %s1494_s28 }
 0x5ab   :  { %v351_v59 = vpop.permute.xlu1 %350 }
 0x5ac   :  { %1287 = vmatmul.mubr.msk.f32.vlgmr.msra.gmra.mrb[2].mxu1 %vm143_vm6, %v351_v59 }
 0x5ad   :  { %1389 = vmatpush3.bf16.msra.mxu1 %v1585_v19  ;;  %1308 = vmatprep.mubr.msk.f32.mxu1 %vm1490_vm0, %v1491_v3 }
 0x5ae   :  { %1390 = vmatprep.subr.bf16.mxu1 %v1489_v1 }
 0x5b1   :  { %1392 = vmatpush3.bf16.msra.mxu1 %v1589_v20 }
 0x5b2   :  { %1399 = vmatprep.subr.bf16.mxu1 %v1489_v1 }
 0x67f   :  { %v420_v60 = vpop.f32.mrb[2].mxu1 }
 0x680   :  { %v425_v61 = vrot.slane %v420_v60, 6  ;;  %v1288_v62 = vpop.f32.mrb[3].mxu1 }
 0x682   :  { %v427_v63 = vadd.f32 %v425_v61, %v1611_v25 }
 0x684   :  { %1434 = vtanh.f32 %v427_v63 }
 0x68e   :  { %v1435_v0 = vpop.eup %1434 }
 0x68f   :  { %v429_v2 = vmul.f32 %v1435_v0, %v1564_v6 }
 0x691   :  { %v430_v4 = vadd.f32 %v429_v2, %v1616_v30 }
 0x693   :  { %436 = vrot.lane.b32.xlu0 %v430_v4, %s1493_s3  ;;  %v434_v9 = vmul.f32 %v432_v8, %v430_v4 }
 0x705   :  { %v437_v5 = vpop.permute.xlu0 %436 }
 0x706   :  { %v439_v7 = vmul.f32 %v437_v5, %v430_v4 }
 0x708   :  { %441 = vrot.lane.b32.xlu1 %v439_v7, %s1494_s28 }
 0x77a   :  { %v442_v10 = vpop.permute.xlu1 %441 }
 0x77b   :  { %v444_v11 = vadd.f32 %v442_v10, %v434_v9 }
 0x77d   :  { %1436 = vtanh.f32 %v444_v11  ;;  %v540_v29 = vrot.slane %v444_v11, 7 }
 0x787   :  { %v1437_v12 = vpop.eup %1436 }
 0x788   :  { %447 = vrot.lane.b32.xlu0 %v1437_v12, %s1493_s3 }
 0x7fa   :  { %v448_v13 = vpop.permute.xlu0 %447 }
 0x7fb   :  { %v1654_v14 = vmul.f32 %v448_v13, %v430_v4 }
 0x7fd   :  { %v457_v15 = vrot.slane %v1654_v14, 2 }
 0x7ff   :  { %458 = vrot.lane.b32.xlu1 %v457_v15, %s1494_s28 }
 0x871   :  { %v459_v16 = vpop.permute.xlu1 %458 }
 0x872   :  { %1298 = vmatmul.mubr.msk.f32.vlgmr.msra.gmra.mrb[4].mxu0 %vm143_vm6, %v459_v16 }
 0x873   :  { %1395 = vmatpush3.bf16.msra.mxu0 %v1585_v19  ;;  %1319 = vmatprep.mubr.msk.f32.mxu0 %vm1490_vm0, %v1491_v3 }
 0x874   :  { %1396 = vmatprep.subr.bf16.mxu0 %v1489_v1 }
 0x877   :  { %1398 = vmatpush3.bf16.msra.mxu0 %v1589_v20 }
 0x878   :  { %1405 = vmatprep.subr.bf16.mxu0 %v1489_v1 }
 0x945   :  { %v528_v17 = vpop.f32.mrb[4].mxu0 }
 0x946   :  { %v533_v18 = vrot.slane %v528_v17, 5  ;;  %v1299_v21 = vpop.f32.mrb[5].mxu0 }
 0x948   :  { %v535_v22 = vadd.f32 %v533_v18, %v1611_v25 }
 0x94a   :  { %1438 = vtanh.f32 %v535_v22 }
 0x954   :  { %v1439_v23 = vpop.eup %1438 }
 0x955   :  { %v537_v24 = vmul.f32 %v1439_v23, %v1564_v6 }
 0x957   :  { %v538_v26 = vadd.f32 %v537_v24, %v1616_v30 }
 0x959   :  { %544 = vrot.lane.b32.xlu0 %v538_v26, %s1493_s3  ;;  %v542_v31 = vmul.f32 %v540_v29, %v538_v26 }
 0x9cb   :  { %v545_v27 = vpop.permute.xlu0 %544 }
 0x9cc   :  { %v547_v28 = vmul.f32 %v545_v27, %v538_v26 }
 0x9ce   :  { %549 = vrot.lane.b32.xlu1 %v547_v28, %s1494_s28 }
 0xa40   :  { %v550_v32 = vpop.permute.xlu1 %549 }
 0xa41   :  { %v552_v33 = vadd.f32 %v550_v32, %v542_v31 }
 0xa43   :  { %1440 = vtanh.f32 %v552_v33  ;;  %v648_v48 = vrot.slane %v552_v33, 7 }
 0xa4d   :  { %v1441_v34 = vpop.eup %1440 }
 0xa4e   :  { %555 = vrot.lane.b32.xlu0 %v1441_v34, %s1493_s3 }
 0xac0   :  { %v556_v35 = vpop.permute.xlu0 %555 }
 0xac1   :  { %v1671_v36 = vmul.f32 %v556_v35, %v538_v26 }
 0xac3   :  { %v565_v37 = vrot.slane %v1671_v36, 3 }
 0xac5   :  { %566 = vrot.lane.b32.xlu1 %v565_v37, %s1494_s28 }
 0xb37   :  { %v567_v38 = vpop.permute.xlu1 %566 }
 0xb38   :  { %1309 = vmatmul.mubr.msk.f32.vlgmr.msra.gmra.mrb[4].mxu1 %vm143_vm6, %v567_v38 }
 0xb39   :  { %1401 = vmatpush3.bf16.msra.mxu1 %v1585_v19  ;;  %1330 = vmatprep.mubr.msk.f32.mxu1 %vm1490_vm0, %v1491_v3 }
 0xb3a   :  { %1402 = vmatprep.subr.bf16.mxu1 %v1489_v1 }
 0xb3d   :  { %1404 = vmatpush3.bf16.msra.mxu1 %v1589_v20 }
 0xb3e   :  { %1411 = vmatprep.subr.bf16.mxu1 %v1489_v1 }
 0xc0b   :  { %v636_v39 = vpop.f32.mrb[4].mxu1 }
 0xc0c   :  { %v641_v40 = vrot.slane %v636_v39, 4  ;;  %v1310_v41 = vpop.f32.mrb[5].mxu1 }
 0xc0e   :  { %v643_v42 = vadd.f32 %v641_v40, %v1611_v25 }
 0xc10   :  { %1442 = vtanh.f32 %v643_v42 }
 0xc1a   :  { %v1443_v43 = vpop.eup %1442 }
 0xc1b   :  { %v645_v44 = vmul.f32 %v1443_v43, %v1564_v6 }
 0xc1d   :  { %v646_v45 = vadd.f32 %v645_v44, %v1616_v30 }
 0xc1f   :  { %652 = vrot.lane.b32.xlu0 %v646_v45, %s1493_s3  ;;  %v650_v49 = vmul.f32 %v648_v48, %v646_v45 }
 0xc91   :  { %v653_v46 = vpop.permute.xlu0 %652 }
 0xc92   :  { %v655_v47 = vmul.f32 %v653_v46, %v646_v45 }
 0xc94   :  { %657 = vrot.lane.b32.xlu1 %v655_v47, %s1494_s28 }
 0xd06   :  { %v658_v50 = vpop.permute.xlu1 %657 }
 0xd07   :  { %v660_v51 = vadd.f32 %v658_v50, %v650_v49 }
 0xd09   :  { %1444 = vtanh.f32 %v660_v51 }
 0xd13   :  { %v1445_v52 = vpop.eup %1444 }
 0xd14   :  { %663 = vrot.lane.b32.xlu0 %v1445_v52, %s1493_s3 }
 0xd86   :  { %v664_v53 = vpop.permute.xlu0 %663 }
 0xd87   :  { %v1688_v54 = vmul.f32 %v664_v53, %v646_v45  ;;  %v1082_v53 = vld [vmem:[%s1772_s6] sm:$0xf] }
 0xd89   :  { %v673_v55 = vrot.slane %v1688_v54, 4 }
 0xd8b   :  { %674 = vrot.lane.b32.xlu1 %v673_v55, %s1494_s28 }
 0xdfd   :  { %v675_v56 = vpop.permute.xlu1 %674 }
 0xdfe   :  { %1320 = vmatmul.mubr.msk.f32.vlgmr.msra.gmra.mrb[6].mxu0 %vm143_vm6, %v675_v56 }
 0xdff   :  { %1407 = vmatpush3.bf16.msra.mxu0 %v1585_v19  ;;  %1341 = vmatprep.mubr.msk.f32.mxu0 %vm1490_vm0, %v1491_v3 }
 0xe00   :  { %1408 = vmatprep.subr.bf16.mxu0 %v1489_v1 }
 0xe03   :  { %1410 = vmatpush3.bf16.msra.mxu0 %v1589_v20  ;;  %v756_v20 = vrot.slane %v660_v51, 7  ;;  %v1000_v51 = vld [vmem:[%s1770_s4 + $0x10] sm:$0xff] }
 0xe04   :  { %1355 = vmatprep.subr.mxu0 %v1491_v3 }
 0xed1   :  { %v744_v58 = vpop.f32.mrb[6].mxu0 }
 0xed2   :  { %v749_v59 = vrot.slane %v744_v58, 3  ;;  %v1321_v60 = vpop.f32.mrb[7].mxu0 }
 0xed4   :  { %v751_v61 = vadd.f32 %v749_v59, %v1611_v25 }
 0xed6   :  { %1446 = vtanh.f32 %v751_v61  ;;  %v1194_v61 = vld [vmem:[%s1771_s5] ss:$0 sm:$0xff] }
 0xee0   :  { %v1447_v62 = vpop.eup %1446 }
 0xee1   :  { %v753_v63 = vmul.f32 %v1447_v62, %v1564_v6 }
 0xee3   :  { %v754_v19 = vadd.f32 %v753_v63, %v1616_v30 }
 0xee5   :  { %760 = vrot.lane.b32.xlu0 %v754_v19, %s1493_s3  ;;  %v758_v4 = vmul.f32 %v756_v20, %v754_v19 }
 0xf57   :  { %v761_v0 = vpop.permute.xlu0 %760 }
 0xf58   :  { %v763_v2 = vmul.f32 %v761_v0, %v754_v19  ;;  %v1196_v0 = vld [vmem:[%s1773_s7] ss:$0 sm:$0xff] }
 0xf5a   :  { %765 = vrot.lane.b32.xlu1 %v763_v2, %s1494_s28 }
 0xfcc   :  { %v766_v5 = vpop.permute.xlu1 %765 }
 0xfcd   :  { %v768_v7 = vadd.f32 %v766_v5, %v758_v4 }
 0xfcf   :  { %1448 = vtanh.f32 %v768_v7  ;;  %v864_v26 = vrot.slane %v768_v7, 7 }
 0xfd9   :  { %v1449_v8 = vpop.eup %1448 }
 0xfda   :  { %771 = vrot.lane.b32.xlu0 %v1449_v8, %s1493_s3 }
0x104c   :  { %v772_v9 = vpop.permute.xlu0 %771 }
0x104d   :  { %v774_v10 = vmul.f32 %v772_v9, %v754_v19 }
0x104f   :  { %v781_v11 = vrot.slane %v774_v10, 5 }
0x1051   :  { %782 = vrot.lane.b32.xlu1 %v781_v11, %s1494_s28 }
0x10c3   :  { %v783_v12 = vpop.permute.xlu1 %782 }
0x10c4   :  { %1331 = vmatmul.mubr.msk.f32.vlgmr.msra.gmra.mrb[6].mxu1 %vm143_vm6, %v783_v12 }
0x10c5   :  { %1352 = vmatprep.mubr.msk.f32.mxu1 %vm1490_vm0, %v1491_v3 }
0x1197   :  { %v852_v13 = vpop.f32.mrb[6].mxu1 }
0x1198   :  { %v857_v15 = vrot.slane %v852_v13, 2  ;;  %v1332_v16 = vpop.f32.mrb[7].mxu1 }
0x119a   :  { %v859_v17 = vadd.f32 %v857_v15, %v1611_v25 }
0x119c   :  { %1450 = vtanh.f32 %v859_v17 }
0x11a6   :  { %v1451_v18 = vpop.eup %1450 }
0x11a7   :  { %v861_v21 = vmul.f32 %v1451_v18, %v1564_v6 }
0x11a9   :  { %v862_v22 = vadd.f32 %v861_v21, %v1616_v30 }
0x11ab   :  { %868 = vrot.lane.b32.xlu0 %v862_v22, %s1493_s3  ;;  %v866_v27 = vmul.f32 %v864_v26, %v862_v22 }
0x121d   :  { %v869_v23 = vpop.permute.xlu0 %868 }
0x121e   :  { %v871_v24 = vmul.f32 %v869_v23, %v862_v22 }
0x1220   :  { %873 = vrot.lane.b32.xlu1 %v871_v24, %s1494_s28 }
0x1292   :  { %v874_v28 = vpop.permute.xlu1 %873 }
0x1293   :  { %v876_v29 = vadd.f32 %v874_v28, %v866_v27 }
0x1295   :  { %1452 = vtanh.f32 %v876_v29 }
0x129f   :  { %v1453_v31 = vpop.eup %1452 }
0x12a0   :  { %879 = vrot.lane.b32.xlu0 %v1453_v31, %s1493_s3 }
0x1312   :  { %v880_v32 = vpop.permute.xlu0 %879 }
0x1313   :  { %v882_v33 = vmul.f32 %v880_v32, %v862_v22 }
0x1315   :  { %v889_v34 = vrot.slane %v882_v33, 6 }
0x1317   :  { %890 = vrot.lane.b32.xlu1 %v889_v34, %s1494_s28 }
0x1389   :  { %v891_v35 = vpop.permute.xlu1 %890 }
0x138a   :  { %1342 = vmatmul.mubr.msk.f32.vlgmr.msra.gmra.mrb[8].mxu0 %vm143_vm6, %v891_v35 }
0x138b   :  { %1357 = vmatprep.mubr.msk.f32.mxu0 %vm1490_vm0, %v1491_v3  ;;  %v972_v3 = vrot.slane %v876_v29, 7  ;;  %1356 = vmatpush3.msk.msra.mxu0 %vm1094_vm10, %v1082_v53 }
0x145d   :  { %v960_v37 = vpop.f32.mrb[8].mxu0 }
0x145e   :  { %v965_v38 = vrot.slane %v960_v37, 1  ;;  %v1343_v39 = vpop.f32.mrb[9].mxu0 }
0x1460   :  { %v967_v40 = vadd.f32 %v965_v38, %v1611_v25 }
0x1462   :  { %1454 = vtanh.f32 %v967_v40 }
0x146c   :  { %v1455_v41 = vpop.eup %1454 }
0x146d   :  { %v969_v42 = vmul.f32 %v1455_v41, %v1564_v6 }
0x146f   :  { %v970_v43 = vadd.f32 %v969_v42, %v1616_v30 }
0x1471   :  { %976 = vrot.lane.b32.xlu0 %v970_v43, %s1493_s3  ;;  %v974_v25 = vmul.f32 %v972_v3, %v970_v43 }
0x14e3   :  { %v977_v44 = vpop.permute.xlu0 %976 }
0x14e4   :  { %v979_v45 = vmul.f32 %v977_v44, %v970_v43 }
0x14e6   :  { %981 = vrot.lane.b32.xlu1 %v979_v45, %s1494_s28 }
0x14ea   :  { %344 = vrot.lane.b32.xlu1 %v1637_v57, %s1494_s28  ;;  %v998_v57 = vld [vmem:[%s1770_s4] sm:$0xff] }
0x14ee   :  { %560 = vrot.lane.b32.xlu1 %v1671_v36, %s1494_s28  ;;  %v999_v36 = vld [vmem:[%s1770_s4 + $0x8] sm:$0xff] }
0x14ef   :  { %v1412_v50 = vpack.c.bf16 %v999_v36, %v998_v57 }
0x14f1   :  { %1413 = vmatpush3.bf16.msra.mxu1 %v1412_v50 }
0x14f2   :  { %776 = vrot.lane.b32.xlu1 %v774_v10, %s1494_s28  ;;  %1414 = vmatprep.subr.bf16.mxu1 %v1489_v1 }
0x1558   :  { %v982_v46 = vpop.permute.xlu1 %981 }
0x1559   :  { %v984_v6 = vadd.f32 %v982_v46, %v974_v25 }
0x155b   :  { %1456 = vtanh.f32 %v984_v6 }
0x155c   :  { %v345_v30 = vpop.permute.xlu1 %344 }
0x155d   :  { %348 = vst.msk [vmem:[#allocation2] sm:$0x2] %vm347_vm7, %v345_v30 }
0x1560   :  { %v561_v47 = vpop.permute.xlu1 %560 }
0x1561   :  { %564 = vst.msk [vmem:[#allocation2] sm:$0x8] %vm563_vm8, %v561_v47 }
0x1564   :  { %v777_v48 = vpop.permute.xlu1 %776 }
0x1565   :  { %v1457_v49 = vpop.eup %1456  ;;  %780 = vst.msk [vmem:[#allocation2] sm:$0x20] %vm779_vm9, %v777_v48 }
0x1566   :  { %987 = vrot.lane.b32.xlu0 %v1457_v49, %s1493_s3 }
0x156a   :  { %452 = vrot.lane.b32.xlu0 %v1654_v14, %s1494_s28  ;;  %v1001_v14 = vld [vmem:[%s1770_s4 + $0x18] sm:$0xff] }
0x156b   :  { %v1415_v52 = vpack.c.bf16 %v1001_v14, %v1000_v51 }
0x156d   :  { %1416 = vmatpush3.bf16.msra.mxu1 %v1415_v52 }
0x156e   :  { %668 = vrot.lane.b32.xlu0 %v1688_v54, %s1494_s28 }
0x1572   :  { %884 = vrot.lane.b32.xlu0 %v882_v33, %s1494_s28 }
0x15d8   :  { %v988_v54 = vpop.permute.xlu0 %987 }
0x15d9   :  { %v990_v55 = vmul.f32 %v988_v54, %v970_v43 }
0x15db   :  { %992 = vrot.lane.b32.xlu1 %v990_v55, %s1494_s28 }
0x15dc   :  { %v453_v56 = vpop.permute.xlu0 %452 }
0x15dd   :  { %456 = vst.msk [vmem:[#allocation2] sm:$0x4] %vm455_vm11, %v453_v56 }
0x15e0   :  { %v669_v58 = vpop.permute.xlu0 %668 }
0x15e1   :  { %672 = vst.msk [vmem:[#allocation2] sm:$0x10] %vm671_vm12, %v669_v58 }
0x15e4   :  { %v885_v59 = vpop.permute.xlu0 %884 }
0x15e5   :  { %888 = vst.msk [vmem:[#allocation2] sm:$0x40] %vm887_vm13, %v885_v59 }
0x164d   :  { %v993_v1 = vpop.permute.xlu1 %992 }
0x164e   :  { %996 = vst.msk [vmem:[#allocation2] sm:$0x80] %vm995_vm14, %v993_v1 }
0x1655   :  { %v997_v60 = vld [vmem:[#allocation2] sm:$0xff] }
0x1656   :  { %1353 = vmatmul.mubr.msk.f32.vlgmr.msra.gmra.mrb[8].mxu1 %vm143_vm6, %v997_v60 }
0x1729   :  { %v1078_v62 = vpop.f32.mrb[8].mxu1 }
0x172a   :  { %v1079_v63 = vadd.f32 %v1194_v61, %v1078_v62  ;;  %v1354_v19 = vpop.f32.mrb[9].mxu1 }
0x172c   :  { %1358 = vmatmul.mubr.msk.f32.vlgmr.msra.gmra.mrb[10].mxu0 %vm1090_vm15, %v1079_v63 }
0x17ff   :  { %v1164_v2 = vpop.f32.mrb[10].mxu0 }
0x1800   :  { %v1165_v20 = vadd.f32 %v1196_v0, %v1164_v2  ;;  %v1359_v4 = vpop.f32.mrb[11].mxu0 }
0x1802   :  { %v1168_v5 = vsel %vm1090_vm15, %v1165_v20, -inf }
0x1803   :  { %1169 = vmax.xlane.f32.xlu0 %v1168_v5 }
0x1890   :  { %v1170_v7 = vpop.xlane.xlu0 %1169 }
0x1891   :  { %v1171_v8 = vsub.f32 %v1165_v20, %v1170_v7 }
0x1893   :  { %v1172_v9 = vmul.f32 1.442695, %v1171_v8 }
0x1895   :  { %1458 = vpow2.f32 %v1172_v9 }
0x189f   :  { %v1459_v10 = vpop.eup %1458 }
0x18a0   :  { %v1174_v11 = vsel %vm1090_vm15, %v1459_v10, 0.0 }
0x18a1   :  { %1175 = vadd.xlane.f32.xlu1 %v1174_v11 }
0x192e   :  { %v1176_v12 = vpop.xlane.xlu1 %1175 }
0x192f   :  { %1460 = vrcp.f32 %v1176_v12 }
0x1939   :  { %v1461_v13 = vpop.eup %1460 }
0x193a   :  { %v1178_v15 = vmul.f32 %v1461_v13, %v1459_v10 }
0x193c   :  { %1179 = vst.msk [vmem:[%s1774_s8] sm:$0xff] %vm1090_vm15, %v1178_v15 }
0x193d   :  { %1184 = vsyncpa [#allocation4], 1 }

</bundles_post_ra>
